<compile_context>
chip_gen: v7x
topology: tpu7x:2x2x1
jax: 0.10.0
libtpu: 0.0.40
codegen_flags: <defaults>
</compile_context>

<pallas_src>
import jax
import jax.numpy as jnp
from jax.experimental import pallas as pl
from jax.experimental.pallas import tpu as pltpu


def _round_up(x, m):
    return ((x + m - 1) // m) * m


def _mlp_kernel(x_ref, w1_ref, b1_ref, w2_ref, b2_ref, w3_ref, b3_ref, out_ref):
    # x_ref: (TB, 8) f32; w*: (in, out) in compute dtype (bf16 or f32);
    # b*: (1, out) f32; out_ref: (TB, act_dim) f32.
    cd = w1_ref.dtype

    # Layer 1: single K=8 dot on the fused obs_goal input.
    h1 = jnp.dot(x_ref[...].astype(cd), w1_ref[...],
                 preferred_element_type=jnp.float32) + b1_ref[...]
    h1 = jnp.maximum(h1, 0.0)

    # Layer 2.
    h2 = jnp.dot(h1.astype(cd), w2_ref[...],
                 preferred_element_type=jnp.float32) + b2_ref[...]
    h2 = jnp.maximum(h2, 0.0)

    # Layer 3: narrow (act_dim-wide) result stored directly (no lane padding).
    out = jnp.dot(h2.astype(cd), w3_ref[...],
                  preferred_element_type=jnp.float32) + b3_ref[...]
    out_ref[...] = out.astype(out_ref.dtype)


def prepare_params(params, *, compute_dtype=jnp.bfloat16):
    """One-time parameter prep: cast dot operands to compute_dtype, keep biases
    in f32 shaped (1, out) (defensive reshape handles torch-style (out,) biases)."""
    w1, b1, w2, b2, w3, b3 = params

    def _w(w):
        return jnp.asarray(w, compute_dtype)

    def _b(b):
        return jnp.asarray(b, jnp.float32).reshape(1, -1)

    return (_w(w1), _b(b1), _w(w2), _b(b2), _w(w3), _b(b3))


def goal_deep_qnet_forward(obs, goal, prepared_params, *, tb=2048):
    """obs: (B, obs_dim), goal: (B, goal_dim) -> (B, act_dim). obs_type='state' path."""
    w1, b1, w2, b2, w3, b3 = prepared_params
    in_dim, hidden = w1.shape
    act_dim = w3.shape[1]

    # Fused concat once in the wrapper (32 B/row of HBM traffic; negligible).
    x = jnp.concatenate([obs, goal], axis=1).astype(jnp.float32)
    B = x.shape[0]
    assert x.shape[1] == in_dim

    tb = _round_up(max(tb, 8), 8)
    if B <= tb:
        tb_eff = max(8, _round_up(B, 8))
        b_pad = tb_eff
    else:
        tb_eff = tb
        b_pad = _round_up(B, tb)
    if b_pad != B:
        x = jnp.pad(x, ((0, b_pad - B), (0, 0)))

    grid = (b_pad // tb_eff,)
    const_spec = lambda shape: pl.BlockSpec(shape, lambda i: (0, 0))

    out = pl.pallas_call(
        _mlp_kernel,
        out_shape=jax.ShapeDtypeStruct((b_pad, act_dim), jnp.float32),
        grid=grid,
        in_specs=[
            pl.BlockSpec((tb_eff, in_dim), lambda i: (i, 0)),   # obs_goal tile
            const_spec((in_dim, hidden)),                       # w1 (resident)
            const_spec((1, hidden)),                            # b1
            const_spec((hidden, hidden)),                       # w2
            const_spec((1, hidden)),                            # b2
            const_spec((hidden, act_dim)),                      # w3
            const_spec((1, act_dim)),                           # b3
        ],
        out_specs=pl.BlockSpec((tb_eff, act_dim), lambda i: (i, 0)),
        compiler_params=pltpu.CompilerParams(
            dimension_semantics=("parallel",),
            vmem_limit_bytes=48 * 1024 * 1024,
        ),
    )(x, w1, b1, w2, b2, w3, b3)

    if b_pad != B:
        out = out[:B]
    return out


def init_params(key, obs_dim=4, goal_dim=4, hidden=256, act_dim=4):
    """Deterministic init mimicking torch.nn.Linear default U(-1/sqrt(fan_in), 1/sqrt(fan_in)).
    Weights are returned already transposed to (in, out)."""
    dims = [(obs_dim + goal_dim, hidden), (hidden, hidden), (hidden, act_dim)]
    params = []
    for (fan_in, fan_out) in dims:
        key, kw, kb = jax.random.split(key, 3)
        bound = 1.0 / (fan_in ** 0.5)
        w = jax.random.uniform(kw, (fan_in, fan_out), jnp.float32, -bound, bound)
        b = jax.random.uniform(kb, (1, fan_out), jnp.float32, -bound, bound)
        params.extend([w, b])
    return tuple(params)


def _reference_forward(obs, goal, params, cast_dtype=None):
    """Pure-JAX reference. If cast_dtype is set, dot operands are cast like the kernel."""
    w1, b1, w2, b2, w3, b3 = params
    b1 = b1.reshape(1, -1); b2 = b2.reshape(1, -1); b3 = b3.reshape(1, -1)

    def d(a, w):
        if cast_dtype is not None:
            a = a.astype(cast_dtype)
            w = w.astype(cast_dtype)
        return jnp.dot(a, w, preferred_element_type=jnp.float32)

    x = jnp.concatenate([obs, goal], axis=1).astype(jnp.float32)
    h1 = jnp.maximum(d(x, w1) + b1, 0.0)
    h2 = jnp.maximum(d(h1, w2) + b2, 0.0)
    return d(h2, w3) + b3


if __name__ == "__main__":
    key = jax.random.PRNGKey(0)
    k_params, k_obs, k_goal = jax.random.split(key, 3)

    B, obs_dim, goal_dim, act_dim = 2, 4, 4, 4
    params = init_params(k_params, obs_dim, goal_dim, 256, act_dim)

    obs = jax.random.normal(k_obs, (B, obs_dim), jnp.float32)
    goal = jax.random.normal(k_goal, (B, goal_dim), jnp.float32)

    # --- Default (bf16 dot operands) path, small batch / single grid step. ---
    p_bf16 = prepare_params(params, compute_dtype=jnp.bfloat16)
    out = goal_deep_qnet_forward(obs, goal, p_bf16)
    jax.block_until_ready(out)
    assert out.shape == (B, act_dim)
    # Matched reference (same bf16 casts): tight tolerance.
    ref_bf16 = _reference_forward(obs, goal, params, cast_dtype=jnp.bfloat16)
    assert jnp.allclose(out, ref_bf16, atol=2e-3, rtol=2e-3)
    # Original f32 semantics: loose tolerance (bf16 operand rounding only).
    ref_f32 = _reference_forward(obs, goal, params)
    assert jnp.allclose(out, ref_f32, atol=5e-2, rtol=5e-2)

    # --- Exact-f32 compute path matches the PyTorch-equivalent reference tightly. ---
    p_f32 = prepare_params(params, compute_dtype=jnp.float32)
    out_f32 = goal_deep_qnet_forward(obs, goal, p_f32)
    jax.block_until_ready(out_f32)
    assert jnp.allclose(out_f32, ref_f32, atol=1e-4, rtol=1e-4)

    # --- Multi-tile grid path (grid > 1, with batch padding sliced off). ---
    B2 = 5000
    k_obs2, k_goal2 = jax.random.split(jax.random.PRNGKey(1))
    obs2 = jax.random.normal(k_obs2, (B2, obs_dim), jnp.float32)
    goal2 = jax.random.normal(k_goal2, (B2, goal_dim), jnp.float32)
    out2 = goal_deep_qnet_forward(obs2, goal2, p_bf16, tb=2048)
    jax.block_until_ready(out2)
    assert out2.shape == (B2, act_dim)
    ref2_bf16 = _reference_forward(obs2, goal2, params, cast_dtype=jnp.bfloat16)
    assert jnp.allclose(out2, ref2_bf16, atol=2e-3, rtol=2e-3)
    ref2_f32 = _reference_forward(obs2, goal2, params)
    assert jnp.allclose(out2, ref2_f32, atol=5e-2, rtol=5e-2)

    print("KERNEL_OK")
</pallas_src>

<mosaic_0001>
module attributes {stable_mosaic.version = 11 : i64} {
  func.func @_mlp_kernel(%arg0: i32, %arg1: memref<8x8xf32, #tpu.memory_space<vmem>>, %arg2: memref<8x256xbf16, #tpu.memory_space<vmem>>, %arg3: memref<1x256xf32, #tpu.memory_space<vmem>>, %arg4: memref<256x256xbf16, #tpu.memory_space<vmem>>, %arg5: memref<1x256xf32, #tpu.memory_space<vmem>>, %arg6: memref<256x4xbf16, #tpu.memory_space<vmem>>, %arg7: memref<1x4xf32, #tpu.memory_space<vmem>>, %arg8: memref<8x4xf32, #tpu.memory_space<vmem>>) attributes {dimension_semantics = [#tpu.dimension_semantics<parallel>], iteration_bounds = array<i64: 1>, scalar_prefetch = 0 : i64, scratch_operands = 0 : i64, tpu.core_type = #tpu.core_type<tc>, window_params = [{transform_indices = @transform_0, window_bounds = array<i64: 8, 8>}, {pipeline_mode = #tpu.pipeline_mode<synchronous>, transform_indices = @transform_1, window_bounds = array<i64: 8, 256>}, {pipeline_mode = #tpu.pipeline_mode<synchronous>, transform_indices = @transform_2, window_bounds = array<i64: 1, 256>}, {pipeline_mode = #tpu.pipeline_mode<synchronous>, transform_indices = @transform_3, window_bounds = array<i64: 256, 256>}, {pipeline_mode = #tpu.pipeline_mode<synchronous>, transform_indices = @transform_4, window_bounds = array<i64: 1, 256>}, {pipeline_mode = #tpu.pipeline_mode<synchronous>, transform_indices = @transform_5, window_bounds = array<i64: 256, 4>}, {pipeline_mode = #tpu.pipeline_mode<synchronous>, transform_indices = @transform_6, window_bounds = array<i64: 1, 4>}, {transform_indices = @transform_7, window_bounds = array<i64: 8, 4>}]} {
    %c0 = arith.constant 0 : index
    %c0_0 = arith.constant 0 : index
    %0 = vector.load %arg1[%c0, %c0_0] : memref<8x8xf32, #tpu.memory_space<vmem>>, vector<8x8xf32>
    %1 = arith.truncf %0 : vector<8x8xf32> to vector<8x8xbf16>
    %c0_1 = arith.constant 0 : index
    %c0_2 = arith.constant 0 : index
    %2 = vector.load %arg2[%c0_1, %c0_2] : memref<8x256xbf16, #tpu.memory_space<vmem>>, vector<8x256xbf16>
    %cst = arith.constant dense<0.000000e+00> : vector<8x256xf32>
    %3 = tpu.matmul %1, %2, %cst {dimension_numbers = #tpu.dot_dimension_numbers<[1], [0], [0], [1], [0, 0, 1, 1], [], []>} : vector<8x8xbf16>, vector<8x256xbf16>, vector<8x256xf32> -> vector<8x256xf32>
    %c0_3 = arith.constant 0 : index
    %c0_4 = arith.constant 0 : index
    %4 = vector.load %arg3[%c0_3, %c0_4] : memref<1x256xf32, #tpu.memory_space<vmem>>, vector<1x256xf32>
    %5 = vector.broadcast %4 : vector<1x256xf32> to vector<8x256xf32>
    %6 = arith.addf %3, %5 : vector<8x256xf32>
    %cst_5 = arith.constant 0.000000e+00 : f32
    %7 = vector.broadcast %cst_5 : f32 to vector<8x256xf32>
    %8 = arith.maximumf %6, %7 : vector<8x256xf32>
    %9 = arith.truncf %8 : vector<8x256xf32> to vector<8x256xbf16>
    %c0_6 = arith.constant 0 : index
    %c0_7 = arith.constant 0 : index
    %10 = vector.load %arg4[%c0_6, %c0_7] : memref<256x256xbf16, #tpu.memory_space<vmem>>, vector<256x256xbf16>
    %cst_8 = arith.constant dense<0.000000e+00> : vector<8x256xf32>
    %11 = tpu.matmul %9, %10, %cst_8 {dimension_numbers = #tpu.dot_dimension_numbers<[1], [0], [0], [1], [0, 0, 1, 1], [], []>} : vector<8x256xbf16>, vector<256x256xbf16>, vector<8x256xf32> -> vector<8x256xf32>
    %c0_9 = arith.constant 0 : index
    %c0_10 = arith.constant 0 : index
    %12 = vector.load %arg5[%c0_9, %c0_10] : memref<1x256xf32, #tpu.memory_space<vmem>>, vector<1x256xf32>
    %13 = vector.broadcast %12 : vector<1x256xf32> to vector<8x256xf32>
    %14 = arith.addf %11, %13 : vector<8x256xf32>
    %cst_11 = arith.constant 0.000000e+00 : f32
    %15 = vector.broadcast %cst_11 : f32 to vector<8x256xf32>
    %16 = arith.maximumf %14, %15 : vector<8x256xf32>
    %17 = arith.truncf %16 : vector<8x256xf32> to vector<8x256xbf16>
    %c0_12 = arith.constant 0 : index
    %c0_13 = arith.constant 0 : index
    %18 = vector.load %arg6[%c0_12, %c0_13] : memref<256x4xbf16, #tpu.memory_space<vmem>>, vector<256x4xbf16>
    %cst_14 = arith.constant dense<0.000000e+00> : vector<8x4xf32>
    %19 = tpu.matmul %17, %18, %cst_14 {dimension_numbers = #tpu.dot_dimension_numbers<[1], [0], [0], [1], [0, 0, 1, 1], [], []>} : vector<8x256xbf16>, vector<256x4xbf16>, vector<8x4xf32> -> vector<8x4xf32>
    %c0_15 = arith.constant 0 : index
    %c0_16 = arith.constant 0 : index
    %20 = vector.load %arg7[%c0_15, %c0_16] : memref<1x4xf32, #tpu.memory_space<vmem>>, vector<1x4xf32>
    %21 = vector.broadcast %20 : vector<1x4xf32> to vector<8x4xf32>
    %22 = arith.addf %19, %21 : vector<8x4xf32>
    %c0_17 = arith.constant 0 : index
    %c0_18 = arith.constant 0 : index
    %23 = vector.load %arg8[%c0_17, %c0_18] : memref<8x4xf32, #tpu.memory_space<vmem>>, vector<8x4xf32>
    tpu.vector_store %arg8[%c0_17, %c0_18], %22 {strides = array<i32>} : memref<8x4xf32, #tpu.memory_space<vmem>>, vector<8x4xf32>,
    return
  }
  func.func @transform_0(%arg0: i32) -> (i32, i32) {
    %c0_i32 = arith.constant 0 : i32
    %c0_i32_0 = arith.constant 0 : i32
    return %arg0, %c0_i32 : i32, i32
  }
  func.func @transform_1(%arg0: i32) -> (i32, i32) {
    %c0_i32 = arith.constant 0 : i32
    %c0_i32_0 = arith.constant 0 : i32
    %c0_i32_1 = arith.constant 0 : i32
    return %c0_i32, %c0_i32_0 : i32, i32
  }
  func.func @transform_2(%arg0: i32) -> (i32, i32) {
    %c0_i32 = arith.constant 0 : i32
    %c0_i32_0 = arith.constant 0 : i32
    %c0_i32_1 = arith.constant 0 : i32
    return %c0_i32, %c0_i32_0 : i32, i32
  }
  func.func @transform_3(%arg0: i32) -> (i32, i32) {
    %c0_i32 = arith.constant 0 : i32
    %c0_i32_0 = arith.constant 0 : i32
    %c0_i32_1 = arith.constant 0 : i32
    return %c0_i32, %c0_i32_0 : i32, i32
  }
  func.func @transform_4(%arg0: i32) -> (i32, i32) {
    %c0_i32 = arith.constant 0 : i32
    %c0_i32_0 = arith.constant 0 : i32
    %c0_i32_1 = arith.constant 0 : i32
    return %c0_i32, %c0_i32_0 : i32, i32
  }
  func.func @transform_5(%arg0: i32) -> (i32, i32) {
    %c0_i32 = arith.constant 0 : i32
    %c0_i32_0 = arith.constant 0 : i32
    %c0_i32_1 = arith.constant 0 : i32
    return %c0_i32, %c0_i32_0 : i32, i32
  }
  func.func @transform_6(%arg0: i32) -> (i32, i32) {
    %c0_i32 = arith.constant 0 : i32
    %c0_i32_0 = arith.constant 0 : i32
    %c0_i32_1 = arith.constant 0 : i32
    return %c0_i32, %c0_i32_0 : i32, i32
  }
  func.func @transform_7(%arg0: i32) -> (i32, i32) {
    %c0_i32 = arith.constant 0 : i32
    %c0_i32_0 = arith.constant 0 : i32
    return %arg0, %c0_i32 : i32, i32
  }
}

</mosaic_0001>

<bundles_post_ra>
// kernel: tpu_custom_call.1
= control target key start
LH: loop header
LB: loop body
LE: loop exit
PB: predicated region body
PF: predicated region fallthrough
CT: control target
= control target key end

     0   :  { %12 = vsyncpa [#allocation3], 0  ;;  %s717_s24 = smov [#allocation2]   ;;  %s839_s0 = inlined_call_operand.vmem [shape: f32[8,8], index: 0, kind: input, shape index: {}]   ;;  %s840_s1 = inlined_call_operand.vmem [shape: bf16[8,256], index: 1, kind: input, shape index: {}]   ;;  %s841_s2 = inlined_call_operand.vmem [shape: f32[1,256], index: 2, kind: input, shape index: {}]   ;;  %s842_s3 = inlined_call_operand.hbm [shape: bf16[256,256], index: 3, kind: input, shape index: {}]   ;;  %s843_s4 = inlined_call_operand.vmem [shape: f32[1,256], index: 4, kind: input, shape index: {}]   ;;  %s844_s5 = inlined_call_operand.vmem [shape: bf16[256,4], index: 5, kind: input, shape index: {}]   ;;  %s845_s6 = inlined_call_operand.vmem [shape: f32[1,4], index: 6, kind: input, shape index: {}]   ;;  %s846_s7 = inlined_call_operand.vmem [shape: f32[8,4], index: 7, kind: output, shape index: {}]  }
   0x1   :  { %s24_s25 = sshll.u32 %s717_s24, 4  ;;  %s693_s28 = scalar_lea.hbm %s842_s3, 4096  ;;  %s25_s25 = int_to_ptr.vmem [resolvable:$true] %s24_s25 }
   0x2   :  { %p694_p0 = scmp.ne.s32.totalorder %s842_s3, %s693_s28  ;;  %p697_p1 = scmp.lt.u32.totalorder %s693_s28, %s842_s3 }
   0x4   :  { %p699_p2 = pnand %p697_p1, %p694_p0 }
   0x6   :  { %702 = shalt.err (!%p699_p2)
}
   0x7   :  { %s703_s10 = scalar_lea.vmem %s25_s25, 4096  ;;  %p708_p4 = scmp.lt.s32.totalorder %s25_s25, %s25_s25 }
   0x8   :  { %p704_p3 = scmp.ne.s32.totalorder %s25_s25, %s703_s10  ;;  %p709_p5 = scmp.lt.s32.totalorder %s703_s10, %s703_s10 }
   0xa   :  { %p710_p6 = por %p709_p5, %p708_p4 }
   0xc   :  { %p711_p7 = pnand %p710_p6, %p704_p3 }
   0xe   :  { %714 = shalt.err (!%p711_p7)
}
   0xf   :  { %s718_s11 = smov 128   ;;  %s719_s12 = smov 8  }
  0x10   :  { %30 = dma.hbm_to_vmem [thread:$0]  %s842_s3, 4096, %s25_s25, [#allocation3], %s718_s11, %s718_s11, %s719_s12  }
  0x11   :  { %715 = dma.done.wait [#allocation3], 4096  }
  0x12   :  { %716 = vsyncadd [#allocation3], 4294963200  ;;  %v720_v0 = vmov 0   ;;  %v43_v1 = vld [vmem:[%s840_s1] sm:$0xff]  ;;  %vm65_vm0 = vcmask 1043456   ;;  %vm61_vm1 = vcmask 64512   ;;  %v46_v51 = vlaneseq }
  0x13   :  { %104 = vmatprep.mubr.bf16.mxu0 %v720_v0  ;;  %v41_v2 = vld [vmem:[%s839_s0] sm:$0xff]  ;;  %v549_v3 = vcombine.high %v43_v1, %v43_v1  ;;  %v548_v4 = vcombine.low %v43_v1, %v43_v1  ;;  %v632_v7 = vld [vmem:[#allocation2 + $0x14] ss:$8 sps:$4 sm:$0xff]   ;;  %v634_v10 = vld [vmem:[#allocation2 + $0x10] ss:$8 sps:$4 sm:$0xff]   ;;  %vm541_vm2 = vcmask 31744  }
  0x14   :  { %v629_v5 = vld [vmem:[#allocation2 + $0x4] ss:$8 sps:$4 sm:$0xff]   ;;  %v631_v6 = vld [vmem:[#allocation2] ss:$8 sps:$4 sm:$0xff]   ;;  %v42_v9 = vpack.c.bf16 %v41_v2, %v41_v2  ;;  %v638_v13 = vld [vmem:[#allocation2 + $0x34] ss:$8 sps:$4 sm:$0xff]  }
  0x15   :  { %550 = vmatprep.subr.msk.bf16.mxu0 %vm65_vm0, %v549_v3  ;;  %v67_v8 = vsel %vm65_vm0, %v548_v4, 0  ;;  %321 = vmatprep.subr.bf16.mxu1 %v629_v5  ;;  %v635_v11 = vld [vmem:[#allocation2 + $0x24] ss:$8 sps:$4 sm:$0xff]   ;;  %v637_v12 = vld [vmem:[#allocation2 + $0x20] ss:$8 sps:$4 sm:$0xff]   ;;  %v681_v43 = vld [vmem:[%s844_s5 + $0x50] sm:$0xff]  }
  0x16   :  { %73 = vmatpush1.bf16.msra.mxu0 %v67_v8  ;;  %322 = vmatpush1.bf16.msra.mxu1 %v631_v6  ;;  %v640_v14 = vld [vmem:[#allocation2 + $0x30] ss:$8 sps:$4 sm:$0xff]   ;;  %v641_v15 = vld [vmem:[#allocation2 + $0x44] ss:$8 sps:$4 sm:$0xff]   ;;  %v643_v16 = vld [vmem:[#allocation2 + $0x40] ss:$8 sps:$4 sm:$0xff]  }
  0x17   :  { %323 = vmatprep.subr.bf16.mxu1 %v632_v7  ;;  %v644_v17 = vld [vmem:[#allocation2 + $0x54] ss:$8 sps:$4 sm:$0xff]   ;;  %v646_v18 = vld [vmem:[#allocation2 + $0x50] ss:$8 sps:$4 sm:$0xff]   ;;  %v647_v19 = vld [vmem:[#allocation2 + $0x64] ss:$8 sps:$4 sm:$0xff]  }
  0x18   :  { %v649_v20 = vld [vmem:[#allocation2 + $0x60] ss:$8 sps:$4 sm:$0xff]   ;;  %v650_v21 = vld [vmem:[#allocation2 + $0x74] ss:$8 sps:$4 sm:$0xff]   ;;  %v652_v22 = vld [vmem:[#allocation2 + $0x70] ss:$8 sps:$4 sm:$0xff]  }
  0x19   :  { %551 = vmatmul.mubr.msk.bf16.vlgmr.msra.gmra.mrb[0].mxu0 %vm61_vm1, %v42_v9  ;;  %v653_v23 = vld [vmem:[#allocation2 + $0x84] ss:$8 sps:$4 sm:$0xff]   ;;  %v655_v24 = vld [vmem:[#allocation2 + $0x80] ss:$8 sps:$4 sm:$0xff]   ;;  %v656_v25 = vld [vmem:[#allocation2 + $0x94] ss:$8 sps:$4 sm:$0xff]  }
  0x1a   :  { %324 = vmatpush1.bf16.msra.mxu1 %v634_v10  ;;  %v658_v26 = vld [vmem:[#allocation2 + $0x90] ss:$8 sps:$4 sm:$0xff]   ;;  %v659_v27 = vld [vmem:[#allocation2 + $0xa4] ss:$8 sps:$4 sm:$0xff]   ;;  %v661_v28 = vld [vmem:[#allocation2 + $0xa0] ss:$8 sps:$4 sm:$0xff]  }
  0x1b   :  { %325 = vmatprep.subr.bf16.mxu1 %v635_v11  ;;  %v662_v29 = vld [vmem:[#allocation2 + $0xb4] ss:$8 sps:$4 sm:$0xff]   ;;  %v664_v30 = vld [vmem:[#allocation2 + $0xb0] ss:$8 sps:$4 sm:$0xff]   ;;  %v665_v31 = vld [vmem:[#allocation2 + $0xc4] ss:$8 sps:$4 sm:$0xff]  }
  0x1c   :  { %v667_v32 = vld [vmem:[#allocation2 + $0xc0] ss:$8 sps:$4 sm:$0xff]   ;;  %v668_v33 = vld [vmem:[#allocation2 + $0xd4] ss:$8 sps:$4 sm:$0xff]   ;;  %v670_v34 = vld [vmem:[#allocation2 + $0xd0] ss:$8 sps:$4 sm:$0xff]  }
  0x1d   :  { %v671_v35 = vld [vmem:[#allocation2 + $0xe4] ss:$8 sps:$4 sm:$0xff]   ;;  %v673_v36 = vld [vmem:[#allocation2 + $0xe0] ss:$8 sps:$4 sm:$0xff]   ;;  %v674_v37 = vld [vmem:[#allocation2 + $0xf4] ss:$8 sps:$4 sm:$0xff]  }
  0x1e   :  { %326 = vmatpush1.bf16.msra.mxu1 %v637_v12  ;;  %v676_v38 = vld [vmem:[#allocation2 + $0xf0] ss:$8 sps:$4 sm:$0xff]   ;;  %v677_v39 = vld [vmem:[%s844_s5 + $0x40] sm:$0xff]   ;;  %v679_v41 = vld [vmem:[%s844_s5 + $0x48] sm:$0xff]   ;;  %v47_v52 = vshrl.u32 %v46_v51, 7 }
  0x1f   :  { %327 = vmatprep.subr.bf16.mxu1 %v638_v13  ;;  %v678_v40 = vld [vmem:[%s844_s5] sm:$0xff]   ;;  %601 = vmatprep.subr.bf16.mxu0 %v677_v39  ;;  %v680_v42 = vld [vmem:[%s844_s5 + $0x8] sm:$0xff]   ;;  %v682_v44 = vld [vmem:[%s844_s5 + $0x10] sm:$0xff]  }
  0x20   :  { %602 = vmatpush3.bf16.msra.mxu0 %v678_v40  ;;  %v683_v45 = vld [vmem:[%s844_s5 + $0x58] sm:$0xff]   ;;  %v685_v47 = vld [vmem:[%s844_s5 + $0x60] sm:$0xff]   ;;  %v687_v49 = vld [vmem:[%s844_s5 + $0x68] sm:$0xff]   ;;  %v48_v53 = vsub.s32 0, %v47_v52  ;;  %v52_v55 = vsub.s32 1, %v47_v52 }
  0x21   :  { %603 = vmatprep.subr.bf16.mxu0 %v679_v41  ;;  %v684_v46 = vld [vmem:[%s844_s5 + $0x18] sm:$0xff]   ;;  %v686_v48 = vld [vmem:[%s844_s5 + $0x20] sm:$0xff]   ;;  %v688_v50 = vld [vmem:[%s844_s5 + $0x28] sm:$0xff]  }
  0x22   :  { %328 = vmatpush1.bf16.msra.mxu1 %v640_v14  ;;  %v44_v54 = vld [vmem:[%s841_s2] sm:$0x3]  ;;  %v689_v4 = vld [vmem:[%s844_s5 + $0x70] sm:$0xff]   ;;  %v691_v6 = vld [vmem:[%s844_s5 + $0x78] sm:$0xff]  }
  0x23   :  { %329 = vmatprep.subr.bf16.mxu1 %v641_v15  ;;  %v49_v56 = vrot.slane %v44_v54, %v48_v53  ;;  %v53_v57 = vrot.slane %v44_v54, %v52_v55  ;;  %v690_v5 = vld [vmem:[%s844_s5 + $0x30] sm:$0xff]   ;;  %v692_v7 = vld [vmem:[%s844_s5 + $0x38] sm:$0xff]   ;;  %v149_v8 = vld [vmem:[%s843_s4] sm:$0x3] }
  0x24   :  { %604 = vmatpush3.bf16.msra.mxu0 %v680_v42  ;;  %v154_v9 = vrot.slane %v149_v8, %v48_v53  ;;  %v158_v10 = vrot.slane %v149_v8, %v52_v55 }
  0x25   :  { %605 = vmatprep.subr.bf16.mxu0 %v681_v43 }
  0x26   :  { %330 = vmatpush1.bf16.msra.mxu1 %v643_v16 }
  0x27   :  { %331 = vmatprep.subr.bf16.mxu1 %v644_v17 }
  0x28   :  { %606 = vmatpush3.bf16.msra.mxu0 %v682_v44 }
  0x29   :  { %607 = vmatprep.subr.bf16.mxu0 %v683_v45 }
  0x2a   :  { %332 = vmatpush1.bf16.msra.mxu1 %v646_v18 }
  0x2b   :  { %333 = vmatprep.subr.bf16.mxu1 %v647_v19 }
  0x2c   :  { %608 = vmatpush3.bf16.msra.mxu0 %v684_v46 }
  0x2d   :  { %609 = vmatprep.subr.bf16.mxu0 %v685_v47 }
  0x2e   :  { %334 = vmatpush1.bf16.msra.mxu1 %v649_v20 }
  0x2f   :  { %335 = vmatprep.subr.bf16.mxu1 %v650_v21 }
  0x30   :  { %610 = vmatpush3.bf16.msra.mxu0 %v686_v48 }
  0x31   :  { %611 = vmatprep.subr.bf16.mxu0 %v687_v49 }
  0x32   :  { %336 = vmatpush1.bf16.msra.mxu1 %v652_v22  ;;  %v584_v22 = vld [vmem:[%s845_s6] ss:$0 sm:$0xff] }
  0x33   :  { %337 = vmatprep.subr.bf16.mxu1 %v653_v23 }
  0x34   :  { %612 = vmatpush3.bf16.msra.mxu0 %v688_v50 }
  0x35   :  { %613 = vmatprep.subr.bf16.mxu0 %v689_v4 }
  0x36   :  { %338 = vmatpush1.bf16.msra.mxu1 %v655_v24 }
  0x37   :  { %339 = vmatprep.subr.bf16.mxu1 %v656_v25 }
  0x38   :  { %614 = vmatpush3.bf16.msra.mxu0 %v690_v5 }
  0x39   :  { %615 = vmatprep.subr.bf16.mxu0 %v691_v6 }
  0x3a   :  { %340 = vmatpush1.bf16.msra.mxu1 %v658_v26 }
  0x3b   :  { %341 = vmatprep.subr.bf16.mxu1 %v659_v27 }
  0x3c   :  { %616 = vmatpush3.bf16.msra.mxu0 %v692_v7 }
  0x3e   :  { %342 = vmatpush1.bf16.msra.mxu1 %v661_v28 }
  0x3f   :  { %343 = vmatprep.subr.bf16.mxu1 %v662_v29 }
  0x42   :  { %344 = vmatpush1.bf16.msra.mxu1 %v664_v30 }
  0x43   :  { %345 = vmatprep.subr.bf16.mxu1 %v665_v31 }
  0x46   :  { %346 = vmatpush1.bf16.msra.mxu1 %v667_v32 }
  0x47   :  { %347 = vmatprep.subr.bf16.mxu1 %v668_v33 }
  0x4a   :  { %348 = vmatpush1.bf16.msra.mxu1 %v670_v34 }
  0x4b   :  { %349 = vmatprep.subr.bf16.mxu1 %v671_v35 }
  0x4e   :  { %350 = vmatpush1.bf16.msra.mxu1 %v673_v36 }
  0x4f   :  { %351 = vmatprep.subr.bf16.mxu1 %v674_v37 }
  0x52   :  { %352 = vmatpush1.bf16.msra.mxu1 %v676_v38 }
  0xec   :  { %v106_v58 = vpop.f32.mrb[0].mxu0 }
  0xed   :  { %v107_v59 = vadd.f32 %v106_v58, %v49_v56  ;;  %v108_v60 = vpop.f32.mrb[1].mxu0 }
  0xee   :  { %v109_v61 = vadd.f32 %v108_v60, %v53_v57  ;;  %v110_v62 = vpop.f32.mrb[2].mxu0 }
  0xef   :  { %v113_v63 = vmax.f32 %v107_v59, 0.0  ;;  %v111_v0 = vpop.f32.mrb[3].mxu0 }
  0xf0   :  { %v114_v1 = vmax.f32 %v109_v61, 0.0 }
  0xf1   :  { %v115_v3 = vpack.c.bf16 %v113_v63, %v113_v63 }
  0xf2   :  { %v116_v2 = vpack.c.bf16 %v114_v1, %v114_v1 }
  0xf4   :  { %353 = vmatprep.mubr.bf16.mxu1 %v116_v2 }
  0xf5   :  { %354 = vmatmul.mubr.bf16.vlgmr.msra.gmra.mrb[0].mxu1 %v115_v3 }
 0x1c8   :  { %v355_v11 = vpop.f32.mrb[0].mxu1 }
 0x1c9   :  { %v356_v12 = vadd.f32 %v355_v11, %v154_v9  ;;  %v357_v13 = vpop.f32.mrb[1].mxu1 }
 0x1ca   :  { %v358_v14 = vadd.f32 %v357_v13, %v158_v10  ;;  %v359_v15 = vpop.f32.mrb[2].mxu1 }
 0x1cb   :  { %v362_v16 = vmax.f32 %v356_v12, 0.0  ;;  %v360_v17 = vpop.f32.mrb[3].mxu1 }
 0x1cc   :  { %v363_v18 = vmax.f32 %v358_v14, 0.0 }
 0x1cd   :  { %v364_v20 = vpack.c.bf16 %v362_v16, %v362_v16 }
 0x1ce   :  { %v365_v19 = vpack.c.bf16 %v363_v18, %v363_v18 }
 0x1d0   :  { %533 = vmatprep.mubr.bf16.mxu0 %v365_v19 }
 0x1d1   :  { %534 = vmatmul.mubr.bf16.vlgmr.msra.gmra.mrb[4].mxu0 %v364_v20 }
 0x2a4   :  { %v617_v21 = vpop.f32.mrb[4].mxu0 }
 0x2a5   :  { %v618_v23 = vpop.f32.mrb[5].mxu0 }
 0x2a6   :  { %v619_v24 = vadd.f32 %v618_v23, %v617_v21  ;;  %v620_v25 = vpop.f32.mrb[6].mxu0 }
 0x2a7   :  { %v621_v26 = vpop.f32.mrb[7].mxu0 }
 0x2a8   :  { %v536_v27 = vadd.f32 %v619_v24, %v584_v22 }
 0x2aa   :  { %542 = vst.msk [vmem:[%s846_s7] sm:$0xff] %vm541_vm2, %v536_v27 }
 0x2ab   :  { %547 = vsyncpa [#allocation3], 1 }

</bundles_post_ra>
